<compile_context>
chip_gen: v6e
topology: v6e:2x2x1
jax: 0.10.0
libtpu: 0.0.40
codegen_flags: <defaults>
</compile_context>

<pallas_src>
import functools

import jax
import jax.numpy as jnp
from jax.experimental import pallas as pl
from jax.experimental.pallas import tpu as pltpu

_LANE = 128     # lane width (last dim)
_SUBLANE = 8    # sublane width (second-to-last dim)


def _round_up(x, m):
    return (x + m - 1) // m * m


def _vmem_limit_bytes(num_cells, b_pad, d_pad, h_pad):
    """Scoped-VMEM limit derived from the actual operand sizes (not hardcoded)."""
    f32, bf16 = 4, 2
    x_b    = b_pad * d_pad * f32
    h_b    = num_cells * b_pad * h_pad * f32
    w_b    = num_cells * (d_pad + h_pad) * h_pad * bf16
    bias_b = num_cells * _SUBLANE * h_pad * f32          # (1, H_pad) pads to 8 sublanes
    out_b  = num_cells * b_pad * h_pad * f32
    scr_b  = b_pad * (d_pad + h_pad) * f32
    need = x_b + h_b + w_b + bias_b + out_b + scr_b
    # 2x headroom for compiler temporaries; cap below v7x's 64 MiB physical VMEM.
    return int(min(max(2 * need + (1 << 20), 4 << 20), 48 << 20))


def _fused_multirnn_kernel(x_ref, h_ref, w_ref, b_ref, out_ref, xh_scratch,
                           *, num_cells, d_pad, h_pad):
    """Single invocation; statically-unrolled loop over the cell chain.

    x_ref      : (B_pad, D_pad)              padded external input      (f32)
    h_ref      : (n, B_pad, H_pad)           padded previous hidden states (f32)
    w_ref      : (n, D_pad + H_pad, H_pad)   stacked [W_ih ; W_hh]      (bf16)
    b_ref      : (n, 1, H_pad)               biases (sublane-broadcast) (f32)
    out_ref    : (n, B_pad, H_pad)           new hidden states          (f32)
    xh_scratch : (B_pad, D_pad + H_pad)      persistent [x | h] MXU operand (f32)
    """
    # Cell 0 consumes the external input; later cells consume the previous
    # cell's output, which overwrites columns [0, H_pad).  Stale columns
    # [H_pad, D_pad) only ever multiply zero weight rows for cells > 0, so
    # they contribute exactly zero.
    xh_scratch[:, :d_pad] = x_ref[...]

    for cell in range(num_cells):   # static unroll: num_cells is small & static
        # Drop this cell's previous hidden state into the right half of [x|h].
        xh_scratch[:, d_pad:] = h_ref[cell]

        # Single MXU pass: [x | h] @ [W_ih ; W_hh] == x @ W_ih + h @ W_hh.
        # Weights stream from HBM as bf16; compute/accumulate in f32.
        pre = jnp.dot(
            xh_scratch[...],
            w_ref[cell].astype(jnp.float32),
            preferred_element_type=jnp.float32,
        ) + b_ref[cell]                       # (1, H_pad) broadcast over sublanes
        h_next = jnp.tanh(pre)

        out_ref[cell] = h_next.astype(out_ref.dtype)
        if cell + 1 < num_cells:
            # Feed this cell's output to the next cell's input slot.
            xh_scratch[:, :h_pad] = h_next


def _fused_multirnn_call(x_p, h_p, w_all, b_all, *, num_cells, b_pad, d_pad, h_pad):
    kernel = functools.partial(
        _fused_multirnn_kernel, num_cells=num_cells, d_pad=d_pad, h_pad=h_pad
    )
    vmem_spec = pl.BlockSpec(memory_space=pltpu.MemorySpace.VMEM)
    return pl.pallas_call(
        kernel,
        out_shape=jax.ShapeDtypeStruct((num_cells, b_pad, h_pad), jnp.float32),
        in_specs=[vmem_spec, vmem_spec, vmem_spec, vmem_spec],
        out_specs=vmem_spec,
        scratch_shapes=[pltpu.VMEM((b_pad, d_pad + h_pad), jnp.float32)],
        compiler_params=pltpu.CompilerParams(
            vmem_limit_bytes=_vmem_limit_bytes(num_cells, b_pad, d_pad, h_pad),
        ),
    )(x_p, h_p, w_all, b_all)


class MultiRNN:
    """JAX/Pallas equivalent of networks/rim.py::MultiRNN with tanh RNN cells.

    The whole cell chain runs as ONE fused Pallas kernel invocation under ONE
    jax.jit (padding + kernel + slicing).
    """

    def __init__(self, cell_params):
        # cell_params: list of dicts with keys 'w_ih' (D_i, H), 'w_hh' (H, H), 'b' (1, H)
        self.num_cells = len(cell_params)
        self.hidden_size = cell_params[0]["w_hh"].shape[0]
        self.input_size = cell_params[0]["w_ih"].shape[0]

        H = self.hidden_size
        h_pad = _round_up(H, _LANE)
        # Input half of [x | h]: wide enough for both the external input and
        # the chained hidden outputs of cells 1..n-1 (fixes silent clipping
        # when input_size > h_pad).
        d_pad = _round_up(max(self.input_size, H), _LANE)
        self.h_pad = h_pad
        self.d_pad = d_pad

        # Stack + zero-pad weights once at init:
        #   rows [0, D_i)              <- W_ih
        #   rows [d_pad, d_pad + H)    <- W_hh
        # All other rows/cols are zero, so padded lanes and stale input
        # columns contribute exactly zero through the chain.  Stored as bf16:
        # the weight stream is the HBM-bound term at small batch.
        w_all = jnp.zeros((self.num_cells, d_pad + h_pad, h_pad), jnp.float32)
        b_all = jnp.zeros((self.num_cells, 1, h_pad), jnp.float32)
        for i, p in enumerate(cell_params):
            d_i = p["w_ih"].shape[0]
            assert d_i <= d_pad and p["w_hh"].shape[0] == H
            w_all = w_all.at[i, :d_i, :H].set(p["w_ih"].astype(jnp.float32))
            w_all = w_all.at[i, d_pad:d_pad + H, :H].set(p["w_hh"].astype(jnp.float32))
            b_all = b_all.at[i, 0, :H].set(p["b"].reshape(-1).astype(jnp.float32))
        self.w_all = w_all.astype(jnp.bfloat16)
        self.b_all = b_all       # bias stays (n, 1, h_pad): broadcast in-kernel

        self._fwd = jax.jit(self._forward)

    def _forward(self, x, h_stack, w_all, b_all):
        B, D = x.shape
        H = self.hidden_size
        n = self.num_cells
        h_pad, d_pad = self.h_pad, self.d_pad
        b_pad = _round_up(max(B, _SUBLANE), _SUBLANE)

        # Zero-pad activations to (sublane, lane)-aligned tiles.  (Padded batch
        # rows pick up tanh(b); harmless because rows are independent and
        # sliced off below.)
        x_p = jnp.zeros((b_pad, d_pad), jnp.float32).at[:B, :D].set(x)
        h_p = jnp.zeros((n, b_pad, h_pad), jnp.float32).at[:, :B, :H].set(h_stack)

        out_pad = _fused_multirnn_call(
            x_p, h_p, w_all, b_all,
            num_cells=n, b_pad=b_pad, d_pad=d_pad, h_pad=h_pad,
        )

        new_states = [out_pad[i, :B, :H] for i in range(n)]
        return new_states[-1], new_states

    def __call__(self, x, states):
        assert x.shape[1] == self.input_size, "input width mismatch"
        if states is None:
            states = [
                jnp.zeros((x.shape[0], self.hidden_size), jnp.float32)
                for _ in range(self.num_cells)
            ]
        h_stack = jnp.stack(states, axis=0)
        return self._fwd(x, h_stack, self.w_all, self.b_all)


def make_cell_params(key, input_size, hidden_size):
    k1, k2, k3 = jax.random.split(key, 3)
    scale_ih = 1.0 / jnp.sqrt(jnp.float32(input_size))
    scale_hh = 1.0 / jnp.sqrt(jnp.float32(hidden_size))
    return {
        "w_ih": jax.random.uniform(
            k1, (input_size, hidden_size), jnp.float32, -scale_ih, scale_ih
        ),
        "w_hh": jax.random.uniform(
            k2, (hidden_size, hidden_size), jnp.float32, -scale_hh, scale_hh
        ),
        "b": jax.random.uniform(
            k3, (1, hidden_size), jnp.float32, -scale_hh, scale_hh
        ),
    }


if __name__ == "__main__":
    key = jax.random.PRNGKey(0)

    batch = 2
    input_size = 16
    hidden_size = 32
    num_cells = 3

    # Deterministic parameter init (synthetic; no checkpoint load).
    keys = jax.random.split(key, num_cells + 2)
    cell_params = []
    in_dim = input_size
    for i in range(num_cells):
        cell_params.append(make_cell_params(keys[i], in_dim, hidden_size))
        in_dim = hidden_size  # next cell consumes previous cell's output

    model = MultiRNN(cell_params)

    # Example inputs.
    x = jax.random.normal(keys[num_cells], (batch, input_size), jnp.float32)
    states = [
        jax.random.normal(
            jax.random.fold_in(keys[num_cells + 1], i),
            (batch, hidden_size),
            jnp.float32,
        )
        for i in range(num_cells)
    ]

    out, new_states = model(x, states)
    out = jax.block_until_ready(out)
    for s in new_states:
        jax.block_until_ready(s)

    # Sanity check against a pure-JAX reference that uses the SAME
    # bf16-quantized weights the kernel streams from HBM, so the only
    # remaining difference is matmul rounding.
    def ref_forward(x, states, params):
        new_states = []
        for i, p in enumerate(params):
            w_ih = p["w_ih"].astype(jnp.bfloat16).astype(jnp.float32)
            w_hh = p["w_hh"].astype(jnp.bfloat16).astype(jnp.float32)
            h = states[i]
            h_next = jnp.tanh(x @ w_ih + h @ w_hh + p["b"])
            x = h_next
            new_states.append(h_next)
        return x, new_states

    ref_out, ref_states = ref_forward(x, states, cell_params)
    assert out.shape == (batch, hidden_size)
    assert len(new_states) == num_cells
    # Tolerance covers MXU pass-rounding differences vs. the XLA matmuls.
    assert jnp.allclose(out, ref_out, atol=2e-3, rtol=2e-3)
    for a, b in zip(new_states, ref_states):
        assert jnp.allclose(a, b, atol=2e-3, rtol=2e-3)

    print("KERNEL_OK")
</pallas_src>

<mosaic_0001>
module attributes {stable_mosaic.version = 11 : i64} {
  func.func @_fused_multirnn_kernel(%arg0: memref<8x128xf32, #tpu.memory_space<vmem>>, %arg1: memref<3x8x128xf32, #tpu.memory_space<vmem>>, %arg2: memref<3x256x128xbf16, #tpu.memory_space<vmem>>, %arg3: memref<3x1x128xf32, #tpu.memory_space<vmem>>, %arg4: memref<3x8x128xf32, #tpu.memory_space<vmem>>, %arg5: memref<8x256xf32, #tpu.memory_space<vmem>>) attributes {dimension_semantics = [], scalar_prefetch = 0 : i64, scratch_operands = 1 : i64, tpu.core_type = #tpu.core_type<tc>} {
    %c0 = arith.constant 0 : index
    %c0_0 = arith.constant 0 : index
    %0 = vector.load %arg0[%c0, %c0_0] : memref<8x128xf32, #tpu.memory_space<vmem>>, vector<8x128xf32>
    %c0_1 = arith.constant 0 : index
    %c0_2 = arith.constant 0 : index
    %1 = vector.load %arg5[%c0_1, %c0_2] : memref<8x256xf32, #tpu.memory_space<vmem>>, vector<8x128xf32>
    tpu.vector_store %arg5[%c0_1, %c0_2], %0 {strides = array<i32>} : memref<8x256xf32, #tpu.memory_space<vmem>>, vector<8x128xf32>,
    %c0_3 = arith.constant 0 : index
    %c0_4 = arith.constant 0 : index
    %c0_5 = arith.constant 0 : index
    %2 = vector.load %arg1[%c0_3, %c0_4, %c0_5] : memref<3x8x128xf32, #tpu.memory_space<vmem>>, vector<1x8x128xf32>
    %3 = vector.shape_cast %2 : vector<1x8x128xf32> to vector<8x128xf32>
    %c0_6 = arith.constant 0 : index
    %c128 = arith.constant 128 : index
    %4 = vector.load %arg5[%c0_6, %c128] : memref<8x256xf32, #tpu.memory_space<vmem>>, vector<8x128xf32>
    tpu.vector_store %arg5[%c0_6, %c128], %3 {strides = array<i32>} : memref<8x256xf32, #tpu.memory_space<vmem>>, vector<8x128xf32>,
    %c0_7 = arith.constant 0 : index
    %c0_8 = arith.constant 0 : index
    %5 = vector.load %arg5[%c0_7, %c0_8] : memref<8x256xf32, #tpu.memory_space<vmem>>, vector<8x256xf32>
    %c0_9 = arith.constant 0 : index
    %c0_10 = arith.constant 0 : index
    %c0_11 = arith.constant 0 : index
    %6 = vector.load %arg2[%c0_9, %c0_10, %c0_11] : memref<3x256x128xbf16, #tpu.memory_space<vmem>>, vector<1x256x128xbf16>
    %7 = vector.shape_cast %6 : vector<1x256x128xbf16> to vector<256x128xbf16>
    %8 = arith.extf %7 : vector<256x128xbf16> to vector<256x128xf32>
    %cst = arith.constant dense<0.000000e+00> : vector<8x128xf32>
    %9 = tpu.matmul %5, %8, %cst {dimension_numbers = #tpu.dot_dimension_numbers<[1], [0], [0], [1], [0, 0, 1, 1], [], []>} : vector<8x256xf32>, vector<256x128xf32>, vector<8x128xf32> -> vector<8x128xf32>
    %c0_12 = arith.constant 0 : index
    %c0_13 = arith.constant 0 : index
    %c0_14 = arith.constant 0 : index
    %10 = vector.load %arg3[%c0_12, %c0_13, %c0_14] : memref<3x1x128xf32, #tpu.memory_space<vmem>>, vector<1x1x128xf32>
    %11 = vector.shape_cast %10 : vector<1x1x128xf32> to vector<1x128xf32>
    %12 = vector.broadcast %11 : vector<1x128xf32> to vector<8x128xf32>
    %13 = arith.addf %9, %12 : vector<8x128xf32>
    %14 = math.tanh %13 : vector<8x128xf32>
    %c0_15 = arith.constant 0 : index
    %c0_16 = arith.constant 0 : index
    %c0_17 = arith.constant 0 : index
    %15 = vector.load %arg4[%c0_15, %c0_16, %c0_17] : memref<3x8x128xf32, #tpu.memory_space<vmem>>, vector<1x8x128xf32>
    %16 = vector.shape_cast %15 : vector<1x8x128xf32> to vector<8x128xf32>
    %17 = vector.shape_cast %14 : vector<8x128xf32> to vector<1x8x128xf32>
    tpu.vector_store %arg4[%c0_15, %c0_16, %c0_17], %17 {strides = array<i32>} : memref<3x8x128xf32, #tpu.memory_space<vmem>>, vector<1x8x128xf32>,
    %c0_18 = arith.constant 0 : index
    %c0_19 = arith.constant 0 : index
    %18 = vector.load %arg5[%c0_18, %c0_19] : memref<8x256xf32, #tpu.memory_space<vmem>>, vector<8x128xf32>
    tpu.vector_store %arg5[%c0_18, %c0_19], %14 {strides = array<i32>} : memref<8x256xf32, #tpu.memory_space<vmem>>, vector<8x128xf32>,
    %c1 = arith.constant 1 : index
    %c0_20 = arith.constant 0 : index
    %c0_21 = arith.constant 0 : index
    %19 = vector.load %arg1[%c1, %c0_20, %c0_21] : memref<3x8x128xf32, #tpu.memory_space<vmem>>, vector<1x8x128xf32>
    %20 = vector.shape_cast %19 : vector<1x8x128xf32> to vector<8x128xf32>
    %c0_22 = arith.constant 0 : index
    %c128_23 = arith.constant 128 : index
    %21 = vector.load %arg5[%c0_22, %c128_23] : memref<8x256xf32, #tpu.memory_space<vmem>>, vector<8x128xf32>
    tpu.vector_store %arg5[%c0_22, %c128_23], %20 {strides = array<i32>} : memref<8x256xf32, #tpu.memory_space<vmem>>, vector<8x128xf32>,
    %c0_24 = arith.constant 0 : index
    %c0_25 = arith.constant 0 : index
    %22 = vector.load %arg5[%c0_24, %c0_25] : memref<8x256xf32, #tpu.memory_space<vmem>>, vector<8x256xf32>
    %c1_26 = arith.constant 1 : index
    %c0_27 = arith.constant 0 : index
    %c0_28 = arith.constant 0 : index
    %23 = vector.load %arg2[%c1_26, %c0_27, %c0_28] : memref<3x256x128xbf16, #tpu.memory_space<vmem>>, vector<1x256x128xbf16>
    %24 = vector.shape_cast %23 : vector<1x256x128xbf16> to vector<256x128xbf16>
    %25 = arith.extf %24 : vector<256x128xbf16> to vector<256x128xf32>
    %cst_29 = arith.constant dense<0.000000e+00> : vector<8x128xf32>
    %26 = tpu.matmul %22, %25, %cst_29 {dimension_numbers = #tpu.dot_dimension_numbers<[1], [0], [0], [1], [0, 0, 1, 1], [], []>} : vector<8x256xf32>, vector<256x128xf32>, vector<8x128xf32> -> vector<8x128xf32>
    %c1_30 = arith.constant 1 : index
    %c0_31 = arith.constant 0 : index
    %c0_32 = arith.constant 0 : index
    %27 = vector.load %arg3[%c1_30, %c0_31, %c0_32] : memref<3x1x128xf32, #tpu.memory_space<vmem>>, vector<1x1x128xf32>
    %28 = vector.shape_cast %27 : vector<1x1x128xf32> to vector<1x128xf32>
    %29 = vector.broadcast %28 : vector<1x128xf32> to vector<8x128xf32>
    %30 = arith.addf %26, %29 : vector<8x128xf32>
    %31 = math.tanh %30 : vector<8x128xf32>
    %c1_33 = arith.constant 1 : index
    %c0_34 = arith.constant 0 : index
    %c0_35 = arith.constant 0 : index
    %32 = vector.load %arg4[%c1_33, %c0_34, %c0_35] : memref<3x8x128xf32, #tpu.memory_space<vmem>>, vector<1x8x128xf32>
    %33 = vector.shape_cast %32 : vector<1x8x128xf32> to vector<8x128xf32>
    %34 = vector.shape_cast %31 : vector<8x128xf32> to vector<1x8x128xf32>
    tpu.vector_store %arg4[%c1_33, %c0_34, %c0_35], %34 {strides = array<i32>} : memref<3x8x128xf32, #tpu.memory_space<vmem>>, vector<1x8x128xf32>,
    %c0_36 = arith.constant 0 : index
    %c0_37 = arith.constant 0 : index
    %35 = vector.load %arg5[%c0_36, %c0_37] : memref<8x256xf32, #tpu.memory_space<vmem>>, vector<8x128xf32>
    tpu.vector_store %arg5[%c0_36, %c0_37], %31 {strides = array<i32>} : memref<8x256xf32, #tpu.memory_space<vmem>>, vector<8x128xf32>,
    %c2 = arith.constant 2 : index
    %c0_38 = arith.constant 0 : index
    %c0_39 = arith.constant 0 : index
    %36 = vector.load %arg1[%c2, %c0_38, %c0_39] : memref<3x8x128xf32, #tpu.memory_space<vmem>>, vector<1x8x128xf32>
    %37 = vector.shape_cast %36 : vector<1x8x128xf32> to vector<8x128xf32>
    %c0_40 = arith.constant 0 : index
    %c128_41 = arith.constant 128 : index
    %38 = vector.load %arg5[%c0_40, %c128_41] : memref<8x256xf32, #tpu.memory_space<vmem>>, vector<8x128xf32>
    tpu.vector_store %arg5[%c0_40, %c128_41], %37 {strides = array<i32>} : memref<8x256xf32, #tpu.memory_space<vmem>>, vector<8x128xf32>,
    %c0_42 = arith.constant 0 : index
    %c0_43 = arith.constant 0 : index
    %39 = vector.load %arg5[%c0_42, %c0_43] : memref<8x256xf32, #tpu.memory_space<vmem>>, vector<8x256xf32>
    %c2_44 = arith.constant 2 : index
    %c0_45 = arith.constant 0 : index
    %c0_46 = arith.constant 0 : index
    %40 = vector.load %arg2[%c2_44, %c0_45, %c0_46] : memref<3x256x128xbf16, #tpu.memory_space<vmem>>, vector<1x256x128xbf16>
    %41 = vector.shape_cast %40 : vector<1x256x128xbf16> to vector<256x128xbf16>
    %42 = arith.extf %41 : vector<256x128xbf16> to vector<256x128xf32>
    %cst_47 = arith.constant dense<0.000000e+00> : vector<8x128xf32>
    %43 = tpu.matmul %39, %42, %cst_47 {dimension_numbers = #tpu.dot_dimension_numbers<[1], [0], [0], [1], [0, 0, 1, 1], [], []>} : vector<8x256xf32>, vector<256x128xf32>, vector<8x128xf32> -> vector<8x128xf32>
    %c2_48 = arith.constant 2 : index
    %c0_49 = arith.constant 0 : index
    %c0_50 = arith.constant 0 : index
    %44 = vector.load %arg3[%c2_48, %c0_49, %c0_50] : memref<3x1x128xf32, #tpu.memory_space<vmem>>, vector<1x1x128xf32>
    %45 = vector.shape_cast %44 : vector<1x1x128xf32> to vector<1x128xf32>
    %46 = vector.broadcast %45 : vector<1x128xf32> to vector<8x128xf32>
    %47 = arith.addf %43, %46 : vector<8x128xf32>
    %48 = math.tanh %47 : vector<8x128xf32>
    %c2_51 = arith.constant 2 : index
    %c0_52 = arith.constant 0 : index
    %c0_53 = arith.constant 0 : index
    %49 = vector.load %arg4[%c2_51, %c0_52, %c0_53] : memref<3x8x128xf32, #tpu.memory_space<vmem>>, vector<1x8x128xf32>
    %50 = vector.shape_cast %49 : vector<1x8x128xf32> to vector<8x128xf32>
    %51 = vector.shape_cast %48 : vector<8x128xf32> to vector<1x8x128xf32>
    tpu.vector_store %arg4[%c2_51, %c0_52, %c0_53], %51 {strides = array<i32>} : memref<3x8x128xf32, #tpu.memory_space<vmem>>, vector<1x8x128xf32>,
    return
  }
}

</mosaic_0001>

<bundles_post_ra>
// kernel: _forward.1
= control target key start
LH: loop header
LB: loop body
LE: loop exit
PB: predicated region body
PF: predicated region fallthrough
CT: control target
= control target key end

     0   :  { %9 = vsyncpa [#allocation4], 0  ;;  %s871_s15 = smov [#allocation3]   ;;  %s936_s0 = inlined_call_operand.vmem [shape: f32[8,128], index: 0, kind: input, shape index: {}]   ;;  %s937_s1 = inlined_call_operand.vmem [shape: f32[3,8,128], index: 1, kind: input, shape index: {}]   ;;  %s938_s2 = inlined_call_operand.hbm [shape: bf16[3,256,128], index: 2, kind: input, shape index: {}]   ;;  %s939_s3 = inlined_call_operand.vmem [shape: f32[3,1,128], index: 3, kind: input, shape index: {}]   ;;  %s940_s4 = inlined_call_operand.vmem [shape: f32[3,8,128], index: 4, kind: output, shape index: {}]  }
   0x1   :  { %s19_s16 = sshll.u32 %s871_s15, 4  ;;  %s20_s16 = int_to_ptr.vmem [resolvable:$true] %s19_s16 }
   0x2   :  { %s857_s17 = scalar_lea.vmem %s20_s16, 6144  ;;  %p862_p1 = scmp.lt.s32.totalorder %s20_s16, %s20_s16 }
   0x3   :  { %p858_p0 = scmp.ne.s32.totalorder %s20_s16, %s857_s17  ;;  %p863_p2 = scmp.lt.s32.totalorder %s857_s17, %s857_s17 }
   0x5   :  { %p864_p3 = por %p863_p2, %p862_p1 }
   0x7   :  { %p865_p4 = pnand %p864_p3, %p858_p0 }
   0x9   :  { %868 = shalt.err (!%p865_p4)
}
   0xa   :  { %s872_s18 = smov 64   ;;  %s873_s19 = smov 4  }
   0xb   :  { %25 = dma.hbm_to_vmem [thread:$0]  %s938_s2, 6144, %s20_s16, [#allocation4], %s872_s18, %s872_s18, %s873_s19  }
   0xc   :  { %869 = dma.done.wait [#allocation4], 6144  }
   0xd   :  { %870 = vsyncadd [#allocation4], 4294961152  ;;  %v704_v0 = vld [vmem:[#allocation3 + $0x78] sm:$0xff]   ;;  %v703_v2 = vld [vmem:[#allocation3 + $0x70] sm:$0xff]  }
   0xe   :  { %v696_v1 = vld [vmem:[#allocation3 + $0x38] sm:$0xff]   ;;  %v560_v3 = vunpack.c.l.bf16 %v704_v0  ;;  %v561_v4 = vunpack.c.h.bf16 %v704_v0  ;;  %v695_v6 = vld [vmem:[#allocation3 + $0x30] sm:$0xff]   ;;  %v557_v8 = vunpack.c.h.bf16 %v703_v2  ;;  %v702_v10 = vld [vmem:[#allocation3 + $0x68] sm:$0xff]   ;;  %v556_v11 = vunpack.c.l.bf16 %v703_v2 }
   0xf   :  { %v529_v5 = vunpack.c.h.bf16 %v696_v1  ;;  %v528_v7 = vunpack.c.l.bf16 %v696_v1  ;;  %v525_v9 = vunpack.c.h.bf16 %v695_v6  ;;  %v694_v12 = vld [vmem:[#allocation3 + $0x28] sm:$0xff]   ;;  %v33_v13 = vld [vmem:[%s937_s1] sm:$0xff]  ;;  %v524_v14 = vunpack.c.l.bf16 %v695_v6  ;;  %v719_v15 = vld [vmem:[#allocation3 + $0xf8] sm:$0xff]  }
  0x10   :  { %735 = vmatprep.subr.mxu0 %v561_v4  ;;  %172 = vmatprep.mubr.f32.mxu0 %v33_v13  ;;  %v711_v16 = vld [vmem:[#allocation3 + $0xb8] sm:$0xff]   ;;  %v553_v17 = vunpack.c.h.bf16 %v702_v10  ;;  %v521_v18 = vunpack.c.h.bf16 %v694_v12  ;;  %v701_v19 = vld [vmem:[#allocation3 + $0x60] sm:$0xff]   ;;  %v718_v20 = vld [vmem:[#allocation3 + $0xf0] sm:$0xff]   ;;  %v552_v21 = vunpack.c.l.bf16 %v702_v10  ;;  %v624_v23 = vunpack.c.l.bf16 %v719_v15 }
  0x11   :  { %736 = vmatpush3.msra.mxu0 %v529_v5  ;;  %v693_v22 = vld [vmem:[#allocation3 + $0x20] sm:$0xff]   ;;  %v625_v24 = vunpack.c.h.bf16 %v719_v15  ;;  %v593_v25 = vunpack.c.h.bf16 %v711_v16  ;;  %v710_v26 = vld [vmem:[#allocation3 + $0xb0] sm:$0xff]   ;;  %v520_v27 = vunpack.c.l.bf16 %v694_v12  ;;  %v592_v28 = vunpack.c.l.bf16 %v711_v16  ;;  %v700_v32 = vld [vmem:[#allocation3 + $0x58] sm:$0xff]  }
  0x12   :  { %737 = vmatprep.subr.mxu0 %v560_v3  ;;  %v549_v29 = vunpack.c.h.bf16 %v701_v19  ;;  %v621_v30 = vunpack.c.h.bf16 %v718_v20  ;;  %v517_v31 = vunpack.c.h.bf16 %v693_v22  ;;  %v589_v33 = vunpack.c.h.bf16 %v710_v26  ;;  %v717_v34 = vld [vmem:[#allocation3 + $0xe8] sm:$0xff]   ;;  %v692_v36 = vld [vmem:[#allocation3 + $0x18] sm:$0xff]   ;;  %v699_v44 = vld [vmem:[#allocation3 + $0x50] sm:$0xff]  }
  0x13   :  { %738 = vmatpush3.msra.mxu0 %v528_v7  ;;  %770 = vmatprep.subr.mxu1 %v625_v24  ;;  %v548_v35 = vunpack.c.l.bf16 %v701_v19  ;;  %v620_v37 = vunpack.c.l.bf16 %v718_v20  ;;  %v905_v38 = vld [vmem:[#allocation3 + $0xa8] sm:$0xff]   ;;  %v516_v39 = vunpack.c.l.bf16 %v693_v22  ;;  %v588_v40 = vunpack.c.l.bf16 %v710_v26  ;;  %v691_v47 = vld [vmem:[#allocation3 + $0x10] sm:$0xff]   ;;  %v697_v58 = vld [vmem:[#allocation3 + $0x40] sm:$0xff]  }
  0x14   :  { %739 = vmatprep.subr.mxu0 %v557_v8  ;;  %771 = vmatpush3.msra.mxu1 %v593_v25  ;;  %v545_v41 = vunpack.c.h.bf16 %v700_v32  ;;  %v617_v42 = vunpack.c.h.bf16 %v717_v34  ;;  %v513_v43 = vunpack.c.h.bf16 %v692_v36  ;;  %v585_v45 = vunpack.c.h.bf16 %v905_v38  ;;  %v698_v52 = vld [vmem:[#allocation3 + $0x48] sm:$0xff]   ;;  %v499_v60 = vld [vmem:[#allocation3] sm:$0xff]   ;;  %v715_v10 = vld [vmem:[#allocation3 + $0xd8] sm:$0xff]  }
  0x15   :  { %740 = vmatpush3.msra.mxu0 %v525_v9  ;;  %772 = vmatprep.subr.mxu1 %v624_v23  ;;  %v544_v46 = vunpack.c.l.bf16 %v700_v32  ;;  %v616_v48 = vunpack.c.l.bf16 %v717_v34  ;;  %v512_v49 = vunpack.c.l.bf16 %v692_v36  ;;  %v541_v50 = vunpack.c.h.bf16 %v699_v44  ;;  %v690_v54 = vld [vmem:[#allocation3 + $0x8] sm:$0xff]   ;;  %v31_v2 = vld [vmem:[%s936_s0] sm:$0xff]  ;;  %v707_v12 = vld [vmem:[#allocation3 + $0x98] sm:$0xff]  }
  0x16   :  { %741 = vmatprep.subr.mxu0 %v556_v11  ;;  %773 = vmatpush3.msra.mxu1 %v592_v28  ;;  %v509_v51 = vunpack.c.h.bf16 %v691_v47  ;;  %v540_v53 = vunpack.c.l.bf16 %v699_v44  ;;  %v508_v55 = vunpack.c.l.bf16 %v691_v47  ;;  %v537_v56 = vunpack.c.h.bf16 %v698_v52  ;;  %v716_v4 = vld [vmem:[#allocation3 + $0xe0] sm:$0xff]   ;;  %v714_v16 = vld [vmem:[#allocation3 + $0xd0] sm:$0xff]   ;;  %v713_v22 = vld [vmem:[#allocation3 + $0xc8] sm:$0xff]  }
  0x17   :  { %742 = vmatpush3.msra.mxu0 %v524_v14  ;;  %774 = vmatprep.subr.mxu1 %v621_v30  ;;  %v505_v57 = vunpack.c.h.bf16 %v690_v54  ;;  %v536_v59 = vunpack.c.l.bf16 %v698_v52  ;;  %v504_v61 = vunpack.c.l.bf16 %v690_v54  ;;  %v533_v62 = vunpack.c.h.bf16 %v697_v58  ;;  %v708_v6 = vld [vmem:[#allocation3 + $0xa0] sm:$0xff]   ;;  %v705_v24 = vld [vmem:[#allocation3 + $0x88] sm:$0xff]   ;;  %v726_v36 = vld [vmem:[#allocation3 + $0x138] sm:$0xff]  }
  0x18   :  { %743 = vmatprep.subr.mxu0 %v553_v17  ;;  %775 = vmatpush3.msra.mxu1 %v589_v33  ;;  %v501_v63 = vunpack.c.h.bf16 %v499_v60  ;;  %v532_v0 = vunpack.c.l.bf16 %v697_v58  ;;  %v500_v1 = vunpack.c.l.bf16 %v499_v60  ;;  %v584_v3 = vunpack.c.l.bf16 %v905_v38  ;;  %v712_v28 = vld [vmem:[#allocation3 + $0xc0] sm:$0xff]   ;;  %v490_v34 = vld [vmem:[%s937_s1 + $0x8] sm:$0xff] }
  0x19   :  { %744 = vmatpush3.msra.mxu0 %v521_v18  ;;  %776 = vmatprep.subr.mxu1 %v620_v37  ;;  %v613_v5 = vunpack.c.h.bf16 %v716_v4  ;;  %v581_v7 = vunpack.c.h.bf16 %v708_v6  ;;  %v612_v8 = vunpack.c.l.bf16 %v716_v4  ;;  %v580_v9 = vunpack.c.l.bf16 %v708_v6  ;;  %v706_v18 = vld [vmem:[#allocation3 + $0x90] sm:$0xff]   ;;  %v563_v30 = vld [vmem:[#allocation3 + $0x80] sm:$0xff]   ;;  %v724_v47 = vld [vmem:[#allocation3 + $0x128] sm:$0xff]  }
  0x1a   :  { %745 = vmatprep.subr.mxu0 %v552_v21  ;;  %777 = vmatpush3.msra.mxu1 %v588_v40  ;;  %v609_v11 = vunpack.c.h.bf16 %v715_v10  ;;  %v577_v13 = vunpack.c.h.bf16 %v707_v12  ;;  %v608_v14 = vunpack.c.l.bf16 %v715_v10  ;;  %v576_v15 = vunpack.c.l.bf16 %v707_v12  ;;  %v733_v37 = vld [vmem:[#allocation3 + $0x170] sm:$0xff]  }
  0x1b   :  { %746 = vmatpush3.msra.mxu0 %v520_v27  ;;  %778 = vmatprep.subr.mxu1 %v617_v42  ;;  %v605_v17 = vunpack.c.h.bf16 %v714_v16  ;;  %v573_v19 = vunpack.c.h.bf16 %v706_v18  ;;  %v604_v20 = vunpack.c.l.bf16 %v714_v16  ;;  %v572_v21 = vunpack.c.l.bf16 %v706_v18 }
  0x1c   :  { %747 = vmatprep.subr.mxu0 %v549_v29  ;;  %779 = vmatpush3.msra.mxu1 %v585_v45  ;;  %v601_v23 = vunpack.c.h.bf16 %v713_v22  ;;  %v569_v25 = vunpack.c.h.bf16 %v705_v24  ;;  %v600_v26 = vunpack.c.l.bf16 %v713_v22  ;;  %v568_v27 = vunpack.c.l.bf16 %v705_v24  ;;  %v732_v45 = vld [vmem:[#allocation3 + $0x168] sm:$0xff]  }
  0x1d   :  { %748 = vmatpush3.msra.mxu0 %v517_v31  ;;  %780 = vmatprep.subr.mxu1 %v616_v48  ;;  %v597_v29 = vunpack.c.h.bf16 %v712_v28  ;;  %v565_v31 = vunpack.c.h.bf16 %v563_v30  ;;  %v596_v32 = vunpack.c.l.bf16 %v712_v28  ;;  %v564_v33 = vunpack.c.l.bf16 %v563_v30 }
  0x1e   :  { %749 = vmatprep.subr.mxu0 %v548_v35  ;;  %781 = vmatpush3.msra.mxu1 %v584_v3  ;;  %v734_v35 = vld [vmem:[#allocation3 + $0x178] sm:$0xff]   ;;  %v656_v42 = vunpack.c.l.bf16 %v726_v36  ;;  %v648_v58 = vunpack.c.l.bf16 %v724_v47 }
  0x1f   :  { %750 = vmatpush3.msra.mxu0 %v516_v39  ;;  %782 = vmatprep.subr.mxu1 %v613_v5  ;;  %v689_v38 = vunpack.c.h.bf16 %v734_v35  ;;  %v657_v39 = vunpack.c.h.bf16 %v726_v36  ;;  %v688_v40 = vunpack.c.l.bf16 %v734_v35  ;;  %v722_v3 = vld [vmem:[#allocation3 + $0x118] sm:$0xff]  }
  0x20   :  { %751 = vmatprep.subr.mxu0 %v545_v41  ;;  %783 = vmatpush3.msra.mxu1 %v581_v7  ;;  %v725_v41 = vld [vmem:[#allocation3 + $0x130] sm:$0xff]   ;;  %v641_v4 = vunpack.c.h.bf16 %v722_v3  ;;  %v640_v6 = vunpack.c.l.bf16 %v722_v3 }
  0x21   :  { %752 = vmatpush3.msra.mxu0 %v513_v43  ;;  %784 = vmatprep.subr.mxu1 %v612_v8  ;;  %v685_v43 = vunpack.c.h.bf16 %v733_v37  ;;  %v653_v44 = vunpack.c.h.bf16 %v725_v41  ;;  %v652_v48 = vunpack.c.l.bf16 %v725_v41  ;;  %v729_v7 = vld [vmem:[#allocation3 + $0x150] sm:$0xff]  }
  0x22   :  { %753 = vmatprep.subr.mxu0 %v544_v46  ;;  %785 = vmatpush3.msra.mxu1 %v580_v9  ;;  %v684_v46 = vunpack.c.l.bf16 %v733_v37  ;;  %v669_v8 = vunpack.c.h.bf16 %v729_v7  ;;  %v721_v9 = vld [vmem:[#allocation3 + $0x110] sm:$0xff]  }
  0x23   :  { %754 = vmatpush3.msra.mxu0 %v512_v49  ;;  %786 = vmatprep.subr.mxu1 %v609_v11  ;;  %v681_v49 = vunpack.c.h.bf16 %v732_v45  ;;  %v637_v10 = vunpack.c.h.bf16 %v721_v9  ;;  %v668_v11 = vunpack.c.l.bf16 %v729_v7  ;;  %v636_v12 = vunpack.c.l.bf16 %v721_v9 }
  0x24   :  { %755 = vmatprep.subr.mxu0 %v541_v50  ;;  %787 = vmatpush3.msra.mxu1 %v577_v13  ;;  %v649_v50 = vunpack.c.h.bf16 %v724_v47  ;;  %v728_v13 = vld [vmem:[#allocation3 + $0x148] sm:$0xff]  }
  0x25   :  { %756 = vmatpush3.msra.mxu0 %v509_v51  ;;  %788 = vmatprep.subr.mxu1 %v608_v14  ;;  %v680_v51 = vunpack.c.l.bf16 %v732_v45  ;;  %v665_v14 = vunpack.c.h.bf16 %v728_v13 }
  0x26   :  { %757 = vmatprep.subr.mxu0 %v540_v53  ;;  %789 = vmatpush3.msra.mxu1 %v576_v15  ;;  %v489_v53 = vld [vmem:[%s939_s3] ss:$0 sm:$0xff]  ;;  %v720_v15 = vld [vmem:[#allocation3 + $0x108] sm:$0xff]  }
  0x27   :  { %758 = vmatpush3.msra.mxu0 %v508_v55  ;;  %790 = vmatprep.subr.mxu1 %v605_v17  ;;  %v633_v16 = vunpack.c.h.bf16 %v720_v15  ;;  %v664_v17 = vunpack.c.l.bf16 %v728_v13  ;;  %v632_v18 = vunpack.c.l.bf16 %v720_v15 }
  0x28   :  { %759 = vmatprep.subr.mxu0 %v537_v56  ;;  %791 = vmatpush3.msra.mxu1 %v573_v19  ;;  %v727_v19 = vld [vmem:[#allocation3 + $0x140] sm:$0xff]  }
  0x29   :  { %760 = vmatpush3.msra.mxu0 %v505_v57  ;;  %792 = vmatprep.subr.mxu1 %v604_v20  ;;  %v661_v20 = vunpack.c.h.bf16 %v727_v19 }
  0x2a   :  { %761 = vmatprep.subr.mxu0 %v536_v59  ;;  %793 = vmatpush3.msra.mxu1 %v572_v21  ;;  %v731_v59 = vld [vmem:[#allocation3 + $0x160] sm:$0xff]  }
  0x2b   :  { %762 = vmatpush3.msra.mxu0 %v504_v61  ;;  %794 = vmatprep.subr.mxu1 %v601_v23  ;;  %v677_v60 = vunpack.c.h.bf16 %v731_v59  ;;  %v723_v61 = vld [vmem:[#allocation3 + $0x120] sm:$0xff]   ;;  %v660_v23 = vunpack.c.l.bf16 %v727_v19 }
  0x2c   :  { %763 = vmatprep.subr.mxu0 %v533_v62  ;;  %795 = vmatpush3.msra.mxu1 %v569_v25  ;;  %v645_v62 = vunpack.c.h.bf16 %v723_v61  ;;  %v627_v21 = vld [vmem:[#allocation3 + $0x100] sm:$0xff]   ;;  %v494_v25 = vld [vmem:[%s937_s1 + $0x10] sm:$0xff] }
  0x2d   :  { %764 = vmatpush3.msra.mxu0 %v501_v63  ;;  %796 = vmatprep.subr.mxu1 %v600_v26  ;;  %v676_v63 = vunpack.c.l.bf16 %v731_v59  ;;  %v629_v22 = vunpack.c.h.bf16 %v627_v21  ;;  %v628_v24 = vunpack.c.l.bf16 %v627_v21 }
  0x2e   :  { %765 = vmatprep.subr.mxu0 %v532_v0  ;;  %797 = vmatpush3.msra.mxu1 %v568_v27  ;;  %v644_v0 = vunpack.c.l.bf16 %v723_v61  ;;  %v492_v27 = vld [vmem:[%s939_s3 + $0x1] ss:$0 sm:$0xff] }
  0x2f   :  { %766 = vmatpush3.msra.mxu0 %v500_v1  ;;  %798 = vmatprep.subr.mxu1 %v597_v29  ;;  %v730_v1 = vld [vmem:[#allocation3 + $0x158] sm:$0xff]  }
  0x30   :  { %173 = vmatmul.mubr.f32.vlgmr.msra.gmra.mxu0 %v31_v2  ;;  %799 = vmatpush3.msra.mxu1 %v565_v31  ;;  %v673_v2 = vunpack.c.h.bf16 %v730_v1  ;;  %v672_v5 = vunpack.c.l.bf16 %v730_v1 }
  0x31   :  { %800 = vmatprep.subr.mxu1 %v596_v32  ;;  %323 = vmatprep.mubr.f32.mxu1 %v490_v34 }
  0x32   :  { %801 = vmatpush3.msra.mxu1 %v564_v33  ;;  %805 = vmatprep.subr.mxu0 %v689_v38  ;;  %v496_v33 = vld [vmem:[%s939_s3 + $0x2] ss:$0 sm:$0xff] }
  0x33   :  { %806 = vmatpush3.msra.mxu0 %v657_v39  ;;  %475 = vmatprep.mubr.f32.mxu0 %v494_v25 }
  0x34   :  { %807 = vmatprep.subr.mxu0 %v688_v40 }
  0x35   :  { %808 = vmatpush3.msra.mxu0 %v656_v42 }
  0x36   :  { %809 = vmatprep.subr.mxu0 %v685_v43 }
  0x37   :  { %810 = vmatpush3.msra.mxu0 %v653_v44 }
  0x38   :  { %811 = vmatprep.subr.mxu0 %v684_v46 }
  0x39   :  { %812 = vmatpush3.msra.mxu0 %v652_v48 }
  0x3a   :  { %813 = vmatprep.subr.mxu0 %v681_v49 }
  0x3b   :  { %814 = vmatpush3.msra.mxu0 %v649_v50 }
  0x3c   :  { %815 = vmatprep.subr.mxu0 %v680_v51 }
  0x3d   :  { %816 = vmatpush3.msra.mxu0 %v648_v58 }
  0x3e   :  { %817 = vmatprep.subr.mxu0 %v677_v60 }
  0x3f   :  { %818 = vmatpush3.msra.mxu0 %v645_v62 }
  0x40   :  { %819 = vmatprep.subr.mxu0 %v676_v63 }
  0x41   :  { %820 = vmatpush3.msra.mxu0 %v644_v0 }
  0x42   :  { %821 = vmatprep.subr.mxu0 %v673_v2 }
  0x43   :  { %822 = vmatpush3.msra.mxu0 %v641_v4 }
  0x44   :  { %823 = vmatprep.subr.mxu0 %v672_v5 }
  0x45   :  { %824 = vmatpush3.msra.mxu0 %v640_v6 }
  0x46   :  { %825 = vmatprep.subr.mxu0 %v669_v8 }
  0x47   :  { %826 = vmatpush3.msra.mxu0 %v637_v10 }
  0x48   :  { %827 = vmatprep.subr.mxu0 %v668_v11 }
  0x49   :  { %828 = vmatpush3.msra.mxu0 %v636_v12 }
  0x4a   :  { %829 = vmatprep.subr.mxu0 %v665_v14 }
  0x4b   :  { %830 = vmatpush3.msra.mxu0 %v633_v16 }
  0x4c   :  { %831 = vmatprep.subr.mxu0 %v664_v17 }
  0x4d   :  { %832 = vmatpush3.msra.mxu0 %v632_v18 }
  0x4e   :  { %833 = vmatprep.subr.mxu0 %v661_v20 }
  0x4f   :  { %834 = vmatpush3.msra.mxu0 %v629_v22 }
  0x50   :  { %835 = vmatprep.subr.mxu0 %v660_v23 }
  0x51   :  { %836 = vmatpush3.msra.mxu0 %v628_v24 }
  0xf0   :  { %v767_v52 = vpop.f32.mrf.mxu0 }
  0xf2   :  { %v768_v54 = vpop.f32.mrf.mxu0 }
  0xf3   :  { %v769_v55 = vadd.f32 %v768_v54, %v767_v52 }
  0xf5   :  { %v175_v56 = vadd.f32 %v769_v55, %v489_v53 }
  0xf7   :  { %843 = vtanh.f32 %v175_v56 }
 0x104   :  { %v844_v57 = vpop.eup %843 }
 0x105   :  { %179 = vst [vmem:[%s940_s4] sm:$0xff] %v844_v57  ;;  %324 = vmatmul.mubr.f32.vlgmr.msra.gmra.mxu1 %v844_v57 }
 0x1c5   :  { %v802_v26 = vpop.f32.mrf.mxu1 }
 0x1c7   :  { %v803_v28 = vpop.f32.mrf.mxu1 }
 0x1c8   :  { %v804_v29 = vadd.f32 %v803_v28, %v802_v26 }
 0x1ca   :  { %v326_v30 = vadd.f32 %v804_v29, %v492_v27 }
 0x1cc   :  { %845 = vtanh.f32 %v326_v30 }
 0x1d9   :  { %v846_v31 = vpop.eup %845 }
 0x1da   :  { %493 = vst [vmem:[%s940_s4 + $0x8] sm:$0xff] %v846_v31  ;;  %476 = vmatmul.mubr.f32.vlgmr.msra.gmra.mxu0 %v846_v31 }
 0x29a   :  { %v837_v32 = vpop.f32.mrf.mxu0 }
 0x29c   :  { %v838_v34 = vpop.f32.mrf.mxu0 }
 0x29d   :  { %v839_v35 = vadd.f32 %v838_v34, %v837_v32 }
 0x29f   :  { %v478_v36 = vadd.f32 %v839_v35, %v496_v33 }
 0x2a1   :  { %847 = vtanh.f32 %v478_v36 }
 0x2ae   :  { %v848_v37 = vpop.eup %847 }
 0x2af   :  { %497 = vst [vmem:[%s940_s4 + $0x10] sm:$0xff] %v848_v37 }
 0x2b0   :  { %488 = vsyncpa [#allocation4], 1 }

</bundles_post_ra>
